<compile_context>
chip_gen: v5e
topology: v5e:2x2
jax: 0.10.0
libtpu: 0.0.40
codegen_flags: <defaults>
</compile_context>

<pallas_src>
import functools

import jax
import jax.numpy as jnp
from jax.experimental import pallas as pl
from jax.experimental.pallas import tpu as pltpu

_LN_EPS = 1e-5


def _regression_kernel(x_ref, gw_ref, sgw_ref, o_ref, *,
                       inv_h, seq_len, tile_seq, chunks_per_split, needs_mask):
    # x_ref:   (TB, TS, H)  input tile (native dtype; cast to f32 in VMEM)
    # gw_ref:  (1, H)       gamma * w   (resident across the grid)
    # sgw_ref: (1,)         SMEM scalar sum_h gamma*w
    # o_ref:   (1, TB, 1)   partial logit-sum for this (split, batch-tile)
    si = pl.program_id(2)

    @pl.when(si == 0)
    def _init():
        o_ref[...] = jnp.zeros_like(o_ref)

    x = x_ref[...].astype(jnp.float32)                  # (TB, TS, H)
    gw = gw_ref[...][None, :, :]                        # (1, 1, H)

    # One-pass stats fused with the Linear weight contraction.
    s1 = jnp.sum(x, axis=2)                             # (TB, TS)  sum_h x
    s2 = jnp.sum(x * x, axis=2)                         # (TB, TS)  sum_h x^2
    sg = jnp.sum(x * gw, axis=2)                        # (TB, TS)  sum_h x*gw
    mean = s1 * inv_h
    var = s2 * inv_h - mean * mean
    rstd = jax.lax.rsqrt(var + _LN_EPS)
    part = (sg - mean * sgw_ref[0]) * rstd              # (TB, TS)

    if needs_mask:
        # Tail block of a non-dividing sequence tile: zero out padded rows so
        # they don't contribute to the sequence sum.
        seq_block = pl.program_id(0) * chunks_per_split + si
        row = seq_block * tile_seq + jax.lax.broadcasted_iota(
            jnp.int32, part.shape, 1)
        part = jnp.where(row < seq_len, part, 0.0)

    acc = jnp.sum(part, axis=1, keepdims=True)          # (TB, 1)
    o_ref[...] += acc[None]                             # accumulate in-place


def _largest_aligned_divisor(total, cap, align):
    """Largest t <= cap with total % t == 0 and t % align == 0, else None."""
    t = (min(cap, total) // align) * align
    while t >= align:
        if total % t == 0:
            return t
        t -= align
    return None


def regression_forward(x, gamma, beta, w, b):
    """x: (B, S, H) in its native dtype. Returns (B, 1) float32."""
    B, S, H = x.shape
    f32 = jnp.float32

    # Fold parameters once (H-element work, not a full-tensor pre-scale).
    gw = (gamma.astype(f32) * w.astype(f32)).reshape(1, H)
    sgw = jnp.sum(gw).reshape(1)                                   # SMEM scalar
    const = jnp.sum(beta.astype(f32) * w.astype(f32)) + b.reshape(-1)[0].astype(f32)

    # ---- generation-aware VMEM budget / tile sizing ------------------------
    itemsize = x.dtype.itemsize                    # stream x in its native dtype
    try:
        vmem_cap = int(pltpu.get_tpu_info().vmem_capacity_bytes)
    except Exception:
        vmem_cap = 64 * 1024 * 1024                # conservative (v7x-sized)
    vmem_limit = min((vmem_cap * 3) // 4, 100 * 1024 * 1024)   # 48 MiB on v7x, ~96 MiB on v5e/v6e
    budget = (vmem_limit * 4) // 5                 # leave headroom under the limit

    # Batch tile: multiple of 8 or the full batch (the (8,128) rule applies to
    # the (TB, 1) trailing dims of the output block).
    TB = _largest_aligned_divisor(B, 8, 8) or B

    # Sequence tile: 2x double-buffered native x tile + ~3 tile-sized f32
    # temporaries (casted x and the two transient products).
    per_row = TB * H * (2 * itemsize + 3 * 4)
    rows = max(budget // per_row, 8)
    ts_cap = max((rows // 8) * 8, 8)
    if S <= ts_cap:
        TS = S                                     # whole sequence in one block
    else:
        TS = _largest_aligned_divisor(S, ts_cap, 8) or ts_cap
    n_chunks = pl.cdiv(S, TS)
    needs_mask = (S % TS) != 0                     # tail block masked in-kernel

    # If the batch axis gives <2 parallel steps, split the sequence reduction
    # across two parallel chunks (keeps v7x's second TensorCore busy); the
    # partials are combined in the tiny epilogue below.
    nsplit = 2 if (B // TB) < 2 and n_chunks >= 2 and n_chunks % 2 == 0 else 1
    chunks_per_split = n_chunks // nsplit

    grid = (nsplit, B // TB, chunks_per_split)

    kernel = functools.partial(
        _regression_kernel,
        inv_h=1.0 / H, seq_len=S, tile_seq=TS,
        chunks_per_split=chunks_per_split, needs_mask=needs_mask)

    cost = pl.CostEstimate(
        flops=6 * B * S * H,
        transcendentals=B * S,
        bytes_accessed=x.size * itemsize + H * 4 + B * nsplit * 4)

    partials = pl.pallas_call(
        kernel,
        out_shape=jax.ShapeDtypeStruct((nsplit, B, 1), f32),
        grid=grid,
        in_specs=[
            pl.BlockSpec((TB, TS, H),
                         lambda sp, bi, si: (bi, sp * chunks_per_split + si, 0)),
            pl.BlockSpec((1, H), lambda sp, bi, si: (0, 0)),       # gamma*w (resident)
            pl.BlockSpec(memory_space=pltpu.MemorySpace.SMEM),      # sum(gamma*w)
        ],
        out_specs=pl.BlockSpec((1, TB, 1), lambda sp, bi, si: (sp, bi, 0)),
        compiler_params=pltpu.CompilerParams(
            dimension_semantics=("parallel", "parallel", "arbitrary"),
            vmem_limit_bytes=int(vmem_limit)),
        cost_estimate=cost,
    )(x, gw, sgw)

    # Trivial per-batch epilogue (B elements): combine split partials, apply the
    # row-constant terms (sum(beta*w) + bias), mean over seq, tanh, rescale.
    logits = jnp.sum(partials, axis=0) * (1.0 / S) + const          # (B, 1)
    return (jnp.tanh(logits) + 1.0) * 0.5


def _reference(x, gamma, beta, w, b):
    xf = x.astype(jnp.float32)
    mean = jnp.mean(xf, axis=-1, keepdims=True)
    var = jnp.mean((xf - mean) ** 2, axis=-1, keepdims=True)
    xn = (xf - mean) / jnp.sqrt(var + _LN_EPS) * gamma + beta
    pooled = jnp.mean(xn, axis=1)
    logits = pooled @ w.reshape(-1, 1) + b
    return (jnp.tanh(logits) + 1.0) / 2.0


if __name__ == "__main__":
    B, S, H = 2, 8, 32  # batch, seq, hidden_size

    key = jax.random.PRNGKey(0)
    kx, kg, kbe, kw, kb = jax.random.split(key, 5)

    x = jax.random.normal(kx, (B, S, H), dtype=jnp.float32)

    # Parameters (deterministic synthetic init; non-trivial gamma/beta so the
    # folded beta.w / gamma*w paths are actually exercised).
    gamma = 1.0 + 0.1 * jax.random.normal(kg, (H,), dtype=jnp.float32)
    beta = 0.05 * jax.random.normal(kbe, (H,), dtype=jnp.float32)
    bound = 1.0 / (H ** 0.5)
    w = jax.random.uniform(kw, (H,), minval=-bound, maxval=bound,
                           dtype=jnp.float32)
    b = jax.random.uniform(kb, (1,), minval=-bound, maxval=bound,
                           dtype=jnp.float32)

    out = jax.block_until_ready(regression_forward(x, gamma, beta, w, b))
    ref = jax.block_until_ready(_reference(x, gamma, beta, w, b))

    assert out.shape == (B, 1), out.shape
    assert jnp.allclose(out, ref, atol=1e-5, rtol=1e-5), (out, ref)

    print("KERNEL_OK")
</pallas_src>

<mosaic_0001>
module attributes {stable_mosaic.version = 11 : i64} {
  func.func @_regression_kernel(%arg0: i32, %arg1: i32, %arg2: i32, %arg3: memref<2x8x32xf32, #tpu.memory_space<vmem>>, %arg4: memref<1x32xf32, #tpu.memory_space<vmem>>, %arg5: memref<1xf32, #tpu.memory_space<smem>>, %arg6: memref<1x2x1xf32, #tpu.memory_space<vmem>>) attributes {dimension_semantics = [#tpu.dimension_semantics<parallel>, #tpu.dimension_semantics<parallel>, #tpu.dimension_semantics<arbitrary>], iteration_bounds = array<i64: 1, 1, 1>, scalar_prefetch = 0 : i64, scratch_operands = 0 : i64, tpu.core_type = #tpu.core_type<tc>, window_params = [{transform_indices = @transform_0, window_bounds = array<i64: 2, 8, 32>}, {pipeline_mode = #tpu.pipeline_mode<synchronous>, transform_indices = @transform_1, window_bounds = array<i64: 1, 32>}, {transform_indices = @transform_2, window_bounds = array<i64: 1>}, {transform_indices = @transform_3, window_bounds = array<i64: 1, 2, 1>}]} {
    %c0_i32 = arith.constant 0 : i32
    %0 = arith.cmpi eq, %arg2, %c0_i32 : i32
    %1 = arith.extui %0 : i1 to i32
    %c0_i32_0 = arith.constant 0 : i32
    %2 = arith.cmpi ne, %1, %c0_i32_0 : i32
    scf.if %2 {
      %cst_18 = arith.constant 0.000000e+00 : f32
      %32 = vector.broadcast %cst_18 : f32 to vector<1x2x1xf32>
      %c0_19 = arith.constant 0 : index
      %c0_20 = arith.constant 0 : index
      %c0_21 = arith.constant 0 : index
      %33 = vector.load %arg6[%c0_19, %c0_20, %c0_21] : memref<1x2x1xf32, #tpu.memory_space<vmem>>, vector<1x2x1xf32>
      tpu.vector_store %arg6[%c0_19, %c0_20, %c0_21], %32 {strides = array<i32>} : memref<1x2x1xf32, #tpu.memory_space<vmem>>, vector<1x2x1xf32>,
    } else {
    }
    %c0 = arith.constant 0 : index
    %c0_1 = arith.constant 0 : index
    %c0_2 = arith.constant 0 : index
    %3 = vector.load %arg3[%c0, %c0_1, %c0_2] : memref<2x8x32xf32, #tpu.memory_space<vmem>>, vector<2x8x32xf32>
    %c0_3 = arith.constant 0 : index
    %c0_4 = arith.constant 0 : index
    %4 = vector.load %arg4[%c0_3, %c0_4] : memref<1x32xf32, #tpu.memory_space<vmem>>, vector<1x32xf32>
    %5 = vector.shape_cast %4 : vector<1x32xf32> to vector<1x1x32xf32>
    %cst = arith.constant dense<0.000000e+00> : vector<2x8xf32>
    %6 = vector.multi_reduction <add>, %3, %cst [2] : vector<2x8x32xf32> to vector<2x8xf32>
    %7 = arith.mulf %3, %3 : vector<2x8x32xf32>
    %cst_5 = arith.constant dense<0.000000e+00> : vector<2x8xf32>
    %8 = vector.multi_reduction <add>, %7, %cst_5 [2] : vector<2x8x32xf32> to vector<2x8xf32>
    %9 = vector.broadcast %5 : vector<1x1x32xf32> to vector<2x8x32xf32>
    %10 = arith.mulf %3, %9 : vector<2x8x32xf32>
    %cst_6 = arith.constant dense<0.000000e+00> : vector<2x8xf32>
    %11 = vector.multi_reduction <add>, %10, %cst_6 [2] : vector<2x8x32xf32> to vector<2x8xf32>
    %cst_7 = arith.constant 3.125000e-02 : f32
    %12 = vector.broadcast %cst_7 : f32 to vector<2x8xf32>
    %13 = arith.mulf %6, %12 : vector<2x8xf32>
    %cst_8 = arith.constant 3.125000e-02 : f32
    %14 = vector.broadcast %cst_8 : f32 to vector<2x8xf32>
    %15 = arith.mulf %8, %14 : vector<2x8xf32>
    %16 = arith.mulf %13, %13 : vector<2x8xf32>
    %17 = arith.subf %15, %16 : vector<2x8xf32>
    %cst_9 = arith.constant 9.99999974E-6 : f32
    %18 = vector.broadcast %cst_9 : f32 to vector<2x8xf32>
    %19 = arith.addf %17, %18 : vector<2x8xf32>
    %20 = math.rsqrt %19 : vector<2x8xf32>
    %c0_10 = arith.constant 0 : index
    %21 = memref.load %arg5[%c0_10] : memref<1xf32, #tpu.memory_space<smem>>
    %22 = vector.broadcast %21 : f32 to vector<2x8xf32>
    %23 = arith.mulf %13, %22 : vector<2x8xf32>
    %24 = arith.subf %11, %23 : vector<2x8xf32>
    %25 = arith.mulf %24, %20 : vector<2x8xf32>
    %cst_11 = arith.constant dense<0.000000e+00> : vector<2xf32>
    %26 = vector.multi_reduction <add>, %25, %cst_11 [1] : vector<2x8xf32> to vector<2xf32>
    %27 = vector.shape_cast %26 : vector<2xf32> to vector<2x1xf32>
    %c0_12 = arith.constant 0 : index
    %c0_13 = arith.constant 0 : index
    %c0_14 = arith.constant 0 : index
    %28 = vector.load %arg6[%c0_12, %c0_13, %c0_14] : memref<1x2x1xf32, #tpu.memory_space<vmem>>, vector<1x2x1xf32>
    %29 = vector.shape_cast %27 : vector<2x1xf32> to vector<1x2x1xf32>
    %30 = arith.addf %28, %29 : vector<1x2x1xf32>
    %c0_15 = arith.constant 0 : index
    %c0_16 = arith.constant 0 : index
    %c0_17 = arith.constant 0 : index
    %31 = vector.load %arg6[%c0_15, %c0_16, %c0_17] : memref<1x2x1xf32, #tpu.memory_space<vmem>>, vector<1x2x1xf32>
    tpu.vector_store %arg6[%c0_15, %c0_16, %c0_17], %30 {strides = array<i32>} : memref<1x2x1xf32, #tpu.memory_space<vmem>>, vector<1x2x1xf32>,
    return
  }
  func.func @transform_0(%arg0: i32, %arg1: i32, %arg2: i32) -> (i32, i32, i32) {
    %c1_i32 = arith.constant 1 : i32
    %0 = arith.muli %arg0, %c1_i32 : i32
    %1 = arith.addi %0, %arg2 : i32
    %c0_i32 = arith.constant 0 : i32
    %c0_i32_0 = arith.constant 0 : i32
    return %arg1, %1, %c0_i32 : i32, i32, i32
  }
  func.func @transform_1(%arg0: i32, %arg1: i32, %arg2: i32) -> (i32, i32) {
    %c0_i32 = arith.constant 0 : i32
    %c0_i32_0 = arith.constant 0 : i32
    %c0_i32_1 = arith.constant 0 : i32
    return %c0_i32, %c0_i32_0 : i32, i32
  }
  func.func @transform_2(%arg0: i32, %arg1: i32, %arg2: i32) -> i32 {
    %c0_i32 = arith.constant 0 : i32
    %c0_i32_0 = arith.constant 0 : i32
    return %c0_i32 : i32
  }
  func.func @transform_3(%arg0: i32, %arg1: i32, %arg2: i32) -> (i32, i32, i32) {
    %c0_i32 = arith.constant 0 : i32
    %c0_i32_0 = arith.constant 0 : i32
    return %arg0, %arg1, %c0_i32 : i32, i32, i32
  }
}

</mosaic_0001>

<bundles_post_ra>
// kernel: tpu_custom_call.1
= control target key start
LH: loop header
LB: loop body
LE: loop exit
PB: predicated region body
PF: predicated region fallthrough
CT: control target
= control target key end

     0   :  { %9 = vsyncpa [#allocation4], 0  ;;  %s165_s15 = smov [#allocation3]   ;;  %s166_s17 = smov 128   ;;  %s215_s0 = inlined_call_operand.hbm [shape: f32[2,8,32], index: 0, kind: input, shape index: {}]   ;;  %s216_s1 = inlined_call_operand.vmem [shape: f32[1,32], index: 1, kind: input, shape index: {}]   ;;  %s217_s2 = inlined_call_operand.<no memory space> [shape: f32[1], index: 2, kind: input, shape index: {}]   ;;  %s218_s3 = inlined_call_operand.vmem [shape: f32[1,2,1], index: 3, kind: output, shape index: {}]  }
   0x1   :  { %s17_s14 = sshll.u32 %s215_s0, 4  ;;  %s19_s16 = sshll.u32 %s165_s15, 4  ;;  %s18_s14 = int_to_ptr.hbm [resolvable:$true] %s17_s14  ;;  %s20_s16 = int_to_ptr.vmem [resolvable:$true] %s19_s16 }
   0x2   :  { %s167_s18 = smov 8  }
   0x3   :  { %25 = dma.hbm_to_vmem [thread:$0]  %s18_s14, 256, %s20_s16, [#allocation4], %s166_s17, %s166_s17, %s167_s18  }
   0x4   :  { %163 = dma.done.wait [#allocation4], 256  }
   0x5   :  { %164 = vsyncadd [#allocation4], 4294967040  ;;  %vm39_vm0 = vcmask 1024   ;;  %v168_v0 = vmov 0.0   ;;  %vm44_vm1 = vcmask 261120   ;;  %v41_v1 = vld [vmem:[#allocation3] sm:$0xff]  ;;  %v101_v35 = vstv %s217_s2 }
   0x6   :  { %40 = vst.msk [vmem:[%s218_s3] sm:$0x3] %vm39_vm0, %v168_v0  ;;  %v134_v2 = vld [vmem:[%s216_s1] ss:$0 sm:$0xff]  ;;  %v45_v3 = vsel %vm44_vm1, %v41_v1, 0.0  ;;  %v51_v4 = vmul.f32 %v41_v1, %v41_v1  ;;  %v42_v6 = vld [vmem:[#allocation3 + $0x8] sm:$0xff]  ;;  %v110_v41 = vlaneseq }
   0x7   :  { %46 = vadd.xlane.f32.xlu0 %v45_v3  ;;  %v62_v5 = vmul.f32 %v134_v2, %v41_v1  ;;  %v52_v9 = vmul.f32 %v42_v6, %v42_v6  ;;  %v63_v10 = vmul.f32 %v134_v2, %v42_v6  ;;  %v48_v11 = vsel %vm44_vm1, %v42_v6, 0.0 }
   0x8   :  { %v53_v7 = vsel %vm44_vm1, %v51_v4, 0.0  ;;  %v111_v48 = vand.u32 127, %v110_v41  ;;  %vm114_vm8 = vcmask 1041409   ;;  %vm117_vm9 = vcmask 58368  }
   0x9   :  { %54 = vadd.xlane.f32.xlu1 %v53_v7  ;;  %v64_v8 = vsel %vm44_vm1, %v62_v5, 0.0  ;;  %v56_v12 = vsel %vm44_vm1, %v52_v9, 0.0  ;;  %v67_v13 = vsel %vm44_vm1, %v63_v10, 0.0 }
   0xa   :  { %65 = vadd.xlane.f32.xlu2 %v64_v8 }
   0xd   :  { %v121_v57 = vld [vmem:[%s218_s3] sm:$0x3] }
   0xf   :  { %49 = vadd.xlane.f32.xlu0 %v48_v11 }
  0x11   :  { %57 = vadd.xlane.f32.xlu1 %v56_v12 }
  0x12   :  { %68 = vadd.xlane.f32.xlu2 %v67_v13 }
  0x7a   :  { %v47_v14 = vpop.xlane.xlu0 %46 }
  0x7b   :  { %v70_v15 = vmul.f32 0.03125, %v47_v14 }
  0x7c   :  { %v55_v16 = vpop.xlane.xlu1 %54 }
  0x7d   :  { %v74_v17 = vmul.f32 %v70_v15, %v70_v15  ;;  %v72_v18 = vmul.f32 0.03125, %v55_v16  ;;  %v66_v32 = vpop.xlane.xlu2 %65  ;;  %v102_v39 = vmul.f32 %v101_v35, %v70_v15 }
  0x7f   :  { %v76_v19 = vsub.f32 %v72_v18, %v74_v17  ;;  %v104_v46 = vsub.f32 %v66_v32, %v102_v39 }
  0x81   :  { %v78_v20 = vadd.f32 1e-05, %v76_v19 }
  0x82   :  { %v50_v21 = vpop.xlane.xlu0 %49 }
  0x83   :  { %135 = vrsqrt.f32 %v78_v20  ;;  %v71_v22 = vmul.f32 0.03125, %v50_v21  ;;  %vm86_vm3 = vweird.f32 %v78_v20 }
  0x84   :  { %v58_v23 = vpop.xlane.xlu1 %57 }
  0x85   :  { %v75_v24 = vmul.f32 %v71_v22, %v71_v22  ;;  %v73_v25 = vmul.f32 0.03125, %v58_v23  ;;  %v103_v42 = vmul.f32 %v101_v35, %v71_v22  ;;  %v69_v45 = vpop.xlane.xlu2 %68 }
  0x87   :  { %v77_v26 = vsub.f32 %v73_v25, %v75_v24  ;;  %v105_v50 = vsub.f32 %v69_v45, %v103_v42 }
  0x89   :  { %v136_v27 = vpop.eup %135  ;;  %v79_v28 = vadd.f32 1e-05, %v77_v26 }
  0x8a   :  { %v81_v29 = vmul.f32 %v136_v27, %v78_v20  ;;  %vm87_vm2 = vweird.f32 %v136_v27 }
  0x8b   :  { %137 = vrsqrt.f32 %v79_v28  ;;  %vm88_vm4 = vmor %vm86_vm3, %vm87_vm2  ;;  %vm96_vm6 = vweird.f32 %v79_v28 }
  0x8c   :  { %v82_v30 = vmul.f32 %v136_v27, %v81_v29 }
  0x8e   :  { %v83_v31 = vmul.f32 0.5, %v82_v30 }
  0x90   :  { %v84_v33 = vsub.f32 1.5, %v83_v31 }
  0x91   :  { %v138_v34 = vpop.eup %137 }
  0x92   :  { %v91_v36 = vmul.f32 %v138_v34, %v79_v28  ;;  %v85_v37 = vmul.f32 %v136_v27, %v84_v33  ;;  %vm97_vm5 = vweird.f32 %v138_v34 }
  0x93   :  { %vm98_vm7 = vmor %vm96_vm6, %vm97_vm5 }
  0x94   :  { %v92_v38 = vmul.f32 %v138_v34, %v91_v36  ;;  %v89_v43 = vsel %vm88_vm4, %v136_v27, %v85_v37 }
  0x95   :  { %v106_v49 = vmul.f32 %v104_v46, %v89_v43 }
  0x96   :  { %v93_v40 = vmul.f32 0.5, %v92_v38 }
  0x97   :  { %v112_v53 = vperm.slane %v106_v49, %v111_v48 }
  0x98   :  { %v94_v44 = vsub.f32 1.5, %v93_v40 }
  0x9a   :  { %v95_v47 = vmul.f32 %v138_v34, %v94_v44 }
  0x9c   :  { %v99_v51 = vsel %vm98_vm7, %v138_v34, %v95_v47 }
  0x9d   :  { %v107_v52 = vmul.f32 %v105_v50, %v99_v51 }
  0x9f   :  { %v113_v54 = vperm.slane %v107_v52, %v111_v48 }
  0xa1   :  { %v115_v55 = vsel %vm114_vm8, %v113_v54, %v112_v53 }
  0xa2   :  { %v118_v56 = vsel %vm117_vm9, %v115_v55, 0.0 }
  0xa3   :  { %119 = vadd.xlane.f32.xlu0 %v118_v56 }
 0x116   :  { %v120_v58 = vpop.xlane.xlu0 %119 }
 0x117   :  { %v122_v59 = vadd.f32 %v121_v57, %v120_v58 }
 0x119   :  { %124 = vst.msk [vmem:[%s218_s3] sm:$0x3] %vm39_vm0, %v122_v59 }
 0x11a   :  { %129 = vsyncpa [#allocation4], 1 }

</bundles_post_ra>
